<compile_context>
chip_gen: v7x
topology: tpu7x:2x2x1
jax: 0.10.0
libtpu: 0.0.40
codegen_flags: <defaults>
</compile_context>

<pallas_src>
import functools

import jax
import jax.numpy as jnp
from jax.experimental import pallas as pl
from jax.experimental.pallas import tpu as pltpu

_LANES = 128
_DEFAULT_BLOCK_ROWS = 8192  # (8192,128) f32 tile = 4 MiB; x2 inputs x2 bufs = 16 MiB VMEM


def _round_up(x, m):
    return (x + m - 1) // m * m


def _sublane_multiple(dtype):
    """Minimum sublane multiple for a (rows, 128) block of this dtype."""
    itemsize = jnp.dtype(dtype).itemsize
    if itemsize >= 4:
        return 8
    if itemsize == 2:
        return 16
    return 32


def _focal_loss_kernel(logits_ref, targets_ref, out_ref, *, alpha, gamma,
                       total_rows, block_rows, has_tail):
    """One grid step: focal-weighted BCE over a (block_rows, 128) tile,
    reduced along sublanes into a lane-dense (1, 128) partial-sum row."""

    def partial_sum(x, t, valid=None):
        # Numerically stable BCE-with-logits (matches torch BCEWithLogitsLoss):
        #   bce = max(x, 0) - x*t + log(1 + exp(-|x|))
        # Reuse e = exp(-|x|) for the sigmoid: 3 EUP ops/elem (exp, log1p, rcp).
        e = jnp.exp(-jnp.abs(x))
        bce = jnp.maximum(x, 0.0) - x * t + jnp.log1p(e)
        denom_inv = pl.reciprocal(1.0 + e, approx=True)   # EUP slot, no VPU refine
        # sigmoid(x)     = 1/(1+e)  if x >= 0 else e/(1+e)
        # 1 - sigmoid(x) = e/(1+e)  if x >= 0 else 1/(1+e)
        one_minus_p = jnp.where(x >= 0.0, e * denom_inv, denom_inv)

        if gamma == 2.0:        # default: square instead of pow (saves log+exp)
            focal_w = alpha * one_minus_p * one_minus_p
        elif gamma == 1.0:
            focal_w = alpha * one_minus_p
        elif gamma == 0.0:
            focal_w = jnp.full_like(one_minus_p, alpha)
        else:
            focal_w = alpha * one_minus_p ** gamma

        contrib = focal_w * bce
        if valid is not None:
            contrib = jnp.where(valid, contrib, 0.0)
        return jnp.sum(contrib, axis=0, keepdims=True)

    x = logits_ref[...].astype(jnp.float32)
    t = targets_ref[...].astype(jnp.float32)

    if not has_tail:
        # All blocks are full: no mask work anywhere.
        out_ref[...] = partial_sum(x, t)
    else:
        blk = pl.program_id(0)
        last = pl.num_programs(0) - 1

        @pl.when(blk != last)
        def _():
            out_ref[...] = partial_sum(x, t)

        @pl.when(blk == last)
        def _():
            # Only the last (partial) block pays for the row mask: rows past
            # the array edge hold unspecified data, so clamp before any
            # transcendental and zero their contribution.
            row = jax.lax.broadcasted_iota(jnp.int32, x.shape, 0)
            valid = (blk * block_rows + row) < total_rows
            xc = jnp.where(valid, x, 0.0)
            tc = jnp.where(valid, t, 0.0)
            out_ref[...] = partial_sum(xc, tc, valid)


def _focal_sum_jax(x, t, alpha, gamma):
    """Plain-JAX focal-BCE sum (used for the <128-element ragged remainder)."""
    bce = jnp.maximum(x, 0.0) - x * t + jnp.log1p(jnp.exp(-jnp.abs(x)))
    p = jax.nn.sigmoid(x)
    w = alpha * (1.0 - p) ** gamma
    return jnp.sum(w * bce)


def focal_loss(logits, targets, alpha=1.0, gamma=2.0,
               block_rows=_DEFAULT_BLOCK_ROWS):
    """Scalar focal loss over arbitrarily shaped logits/targets.

    Inputs may be f32 / bf16 (logits) and f32 / bf16 / int / bool (targets);
    the upcast to f32 happens in-kernel, so no extra HBM pass is added.
    """
    assert logits.shape == targets.shape
    n_elems = logits.size
    alpha = float(alpha)
    gamma = float(gamma)

    flat_logits = logits.reshape(-1)
    flat_targets = targets.reshape(-1)

    rem = n_elems % _LANES
    main = n_elems - rem
    rows = main // _LANES

    total = jnp.float32(0.0)

    if rows > 0:
        logits2d = flat_logits[:main].reshape(rows, _LANES)
        targets2d = flat_targets[:main].reshape(rows, _LANES)

        # Dtype-aware sublane rounding (8 f32 / 16 bf16 / 32 int8-bool).
        sub = max(_sublane_multiple(logits2d.dtype),
                  _sublane_multiple(targets2d.dtype))
        br = _round_up(min(int(block_rows), rows), sub)
        if br > rows:
            br = rows                      # full-dim block is always legal
        n_blocks = pl.cdiv(rows, br)
        has_tail = (rows % br) != 0        # ragged last block needs masking

        kernel = functools.partial(
            _focal_loss_kernel,
            alpha=alpha,
            gamma=gamma,
            total_rows=rows,
            block_rows=br,
            has_tail=has_tail,
        )

        in_blk = pl.BlockSpec((br, _LANES), lambda i: (i, 0))
        partials = pl.pallas_call(
            kernel,
            out_shape=jax.ShapeDtypeStruct((n_blocks, _LANES), jnp.float32),
            grid_spec=pltpu.PrefetchScalarGridSpec(
                num_scalar_prefetch=0,
                grid=(n_blocks,),
                in_specs=[in_blk, in_blk],
                out_specs=pl.BlockSpec((1, _LANES), lambda i: (i, 0)),
            ),
            compiler_params=pltpu.CompilerParams(
                # Each grid step owns its output block -> fully parallel
                # (shards across both TensorCores on v7x; no-op on v5e/v6e).
                dimension_semantics=("parallel",),
                # 8192-row f32 tiles: 2 inputs x 2 buffers x 4 MiB = 16 MiB.
                vmem_limit_bytes=32 * 1024 * 1024,
            ),
        )(logits2d, targets2d)
        total = jnp.sum(partials)

    if rem:
        # <128-element remainder: handled in plain JAX, no full-array pad.
        tail_x = flat_logits[main:].astype(jnp.float32)
        tail_t = flat_targets[main:].astype(jnp.float32)
        total = total + _focal_sum_jax(tail_x, tail_t, alpha, gamma)

    return total * (1.0 / float(n_elems))


def _focal_loss_ref(logits, targets, alpha=1.0, gamma=2.0):
    x = logits.astype(jnp.float32)
    t = targets.astype(jnp.float32)
    bce = jnp.maximum(x, 0.0) - x * t + jnp.log1p(jnp.exp(-jnp.abs(x)))
    p = jax.nn.sigmoid(x)
    w = alpha * (1.0 - p) ** gamma
    return jnp.mean(w * bce)


if __name__ == "__main__":
    key = jax.random.PRNGKey(0)
    k1, k2, k3, k4 = jax.random.split(key, 4)

    # Main case: small NCHW segmentation-head logits, lane-aligned size.
    shape = (2, 4, 16, 16)
    logits = jax.random.normal(k1, shape, dtype=jnp.float32)
    targets = (jax.random.uniform(k2, shape) > 0.5).astype(jnp.float32)
    loss = jax.block_until_ready(focal_loss(logits, targets, alpha=1.0, gamma=2.0))
    ref = _focal_loss_ref(logits, targets, alpha=1.0, gamma=2.0)
    assert jnp.allclose(loss, ref, rtol=1e-3, atol=1e-6), (loss, ref)

    # Ragged case: element count not a multiple of 128 (kernel + JAX tail).
    shape2 = (2, 3, 100)
    logits2 = jax.random.normal(k3, shape2, dtype=jnp.float32)
    targets2 = (jax.random.uniform(k4, shape2) > 0.5).astype(jnp.float32)
    loss2 = jax.block_until_ready(focal_loss(logits2, targets2))
    ref2 = _focal_loss_ref(logits2, targets2)
    assert jnp.allclose(loss2, ref2, rtol=1e-3, atol=1e-6), (loss2, ref2)

    # Narrow-dtype case: native bf16 inputs (dtype-aware sublane tiling,
    # in-kernel upcast, no wrapper astype pass).
    logits3 = jax.random.normal(k1, shape, dtype=jnp.bfloat16)
    targets3 = (jax.random.uniform(k2, shape) > 0.5).astype(jnp.bfloat16)
    loss3 = jax.block_until_ready(focal_loss(logits3, targets3))
    ref3 = _focal_loss_ref(logits3, targets3)
    assert jnp.allclose(loss3, ref3, rtol=2e-3, atol=1e-6), (loss3, ref3)

    print("KERNEL_OK")
</pallas_src>

<mosaic_0001>
module attributes {stable_mosaic.version = 11 : i64} {
  func.func @_focal_loss_kernel(%arg0: i32, %arg1: memref<16x128xf32, #tpu.memory_space<vmem>>, %arg2: memref<16x128xf32, #tpu.memory_space<vmem>>, %arg3: memref<1x128xf32, #tpu.memory_space<vmem>>) attributes {dimension_semantics = [#tpu.dimension_semantics<parallel>], iteration_bounds = array<i64: 1>, scalar_prefetch = 0 : i64, scratch_operands = 0 : i64, tpu.core_type = #tpu.core_type<tc>, window_params = [{transform_indices = @transform_0, window_bounds = array<i64: 16, 128>}, {transform_indices = @transform_1, window_bounds = array<i64: 16, 128>}, {transform_indices = @transform_2, window_bounds = array<i64: 1, 128>}]} {
    %c0 = arith.constant 0 : index
    %c0_0 = arith.constant 0 : index
    %0 = vector.load %arg1[%c0, %c0_0] : memref<16x128xf32, #tpu.memory_space<vmem>>, vector<16x128xf32>
    %c0_1 = arith.constant 0 : index
    %c0_2 = arith.constant 0 : index
    %1 = vector.load %arg2[%c0_1, %c0_2] : memref<16x128xf32, #tpu.memory_space<vmem>>, vector<16x128xf32>
    %2 = math.absf %0 : vector<16x128xf32>
    %cst = arith.constant 0.000000e+00 : f32
    %3 = vector.broadcast %cst : f32 to vector<16x128xf32>
    %4 = arith.subf %3, %2 : vector<16x128xf32>
    %5 = math.exp %4 : vector<16x128xf32>
    %cst_3 = arith.constant 0.000000e+00 : f32
    %6 = vector.broadcast %cst_3 : f32 to vector<16x128xf32>
    %7 = arith.maximumf %0, %6 : vector<16x128xf32>
    %8 = arith.mulf %0, %1 : vector<16x128xf32>
    %9 = arith.subf %7, %8 : vector<16x128xf32>
    %10 = math.log1p %5 : vector<16x128xf32>
    %11 = arith.addf %9, %10 : vector<16x128xf32>
    %cst_4 = arith.constant 1.000000e+00 : f32
    %12 = vector.broadcast %cst_4 : f32 to vector<16x128xf32>
    %13 = arith.addf %12, %5 : vector<16x128xf32>
    %14 = tpu.reciprocal %13 {approx = true} : vector<16x128xf32> -> vector<16x128xf32>
    %cst_5 = arith.constant 0.000000e+00 : f32
    %15 = vector.broadcast %cst_5 : f32 to vector<16x128xf32>
    %16 = arith.cmpf oge, %0, %15 : vector<16x128xf32>
    %17 = arith.mulf %5, %14 : vector<16x128xf32>
    %18 = arith.select %16, %17, %14 : vector<16x128xi1>, vector<16x128xf32>
    %cst_6 = arith.constant 1.000000e+00 : f32
    %19 = vector.broadcast %cst_6 : f32 to vector<16x128xf32>
    %20 = arith.mulf %19, %18 : vector<16x128xf32>
    %21 = arith.mulf %20, %18 : vector<16x128xf32>
    %22 = arith.mulf %21, %11 : vector<16x128xf32>
    %cst_7 = arith.constant dense<0.000000e+00> : vector<128xf32>
    %23 = vector.multi_reduction <add>, %22, %cst_7 [0] : vector<16x128xf32> to vector<128xf32>
    %24 = vector.shape_cast %23 : vector<128xf32> to vector<1x128xf32>
    %c0_8 = arith.constant 0 : index
    %c0_9 = arith.constant 0 : index
    %25 = vector.load %arg3[%c0_8, %c0_9] : memref<1x128xf32, #tpu.memory_space<vmem>>, vector<1x128xf32>
    tpu.vector_store %arg3[%c0_8, %c0_9], %24 {strides = array<i32>} : memref<1x128xf32, #tpu.memory_space<vmem>>, vector<1x128xf32>,
    return
  }
  func.func @transform_0(%arg0: i32) -> (i32, i32) {
    %c0_i32 = arith.constant 0 : i32
    %c0_i32_0 = arith.constant 0 : i32
    return %arg0, %c0_i32 : i32, i32
  }
  func.func @transform_1(%arg0: i32) -> (i32, i32) {
    %c0_i32 = arith.constant 0 : i32
    %c0_i32_0 = arith.constant 0 : i32
    return %arg0, %c0_i32 : i32, i32
  }
  func.func @transform_2(%arg0: i32) -> (i32, i32) {
    %c0_i32 = arith.constant 0 : i32
    %c0_i32_0 = arith.constant 0 : i32
    return %arg0, %c0_i32 : i32, i32
  }
}

</mosaic_0001>

<bundles_post_ra>
// kernel: tpu_custom_call.1
= control target key start
LH: loop header
LB: loop body
LE: loop exit
PB: predicated region body
PF: predicated region fallthrough
CT: control target
= control target key end

     0   :  { %7 = vsyncpa [#allocation3], 0  ;;  %s261_s0 = inlined_call_operand.hbm [shape: f32[16,128], index: 0, kind: input, shape index: {}]   ;;  %s262_s1 = inlined_call_operand.hbm [shape: f32[16,128], index: 1, kind: input, shape index: {}]   ;;  %s263_s2 = inlined_call_operand.hbm [shape: f32[1,128], index: 2, kind: output, shape index: {}]  }
   0x1   :  { %8 = vsyncpa [#allocation6], 0 }
   0x2   :  { %9 = vsyncpa [#allocation4], 0  ;;  %s205_s9 = smov [#allocation2]   ;;  %s133_s13 = scalar_lea.hbm %s261_s0, 256 }
   0x3   :  { %s15_s10 = sshll.u32 %s205_s9, 4  ;;  %p134_p0 = scmp.ne.s32.totalorder %s261_s0, %s133_s13  ;;  %s16_s10 = int_to_ptr.vmem [resolvable:$true] %s15_s10 }
   0x4   :  { %p137_p1 = scmp.lt.u32.totalorder %s133_s13, %s261_s0 }
   0x6   :  { %p139_p2 = pnand %p137_p1, %p134_p0 }
   0x8   :  { %142 = shalt.err (!%p139_p2)
}
   0x9   :  { %s143_s18 = scalar_lea.vmem %s16_s10, 256  ;;  %p148_p4 = scmp.lt.s32.totalorder %s16_s10, %s16_s10 }
   0xa   :  { %p144_p3 = scmp.ne.s32.totalorder %s16_s10, %s143_s18  ;;  %p149_p5 = scmp.lt.s32.totalorder %s143_s18, %s143_s18 }
   0xc   :  { %p150_p6 = por %p149_p5, %p148_p4 }
   0xe   :  { %p151_p7 = pnand %p150_p6, %p144_p3 }
  0x10   :  { %154 = shalt.err (!%p151_p7)
}
  0x11   :  { %s206_s19 = smov 128   ;;  %s207_s20 = smov 8  }
  0x12   :  { %21 = dma.hbm_to_vmem [thread:$0]  %s261_s0, 256, %s16_s10, [#allocation3], %s206_s19, %s206_s19, %s207_s20  }
  0x13   :  { %s208_s23 = smov [#allocation5]   ;;  %s155_s27 = scalar_lea.hbm %s262_s1, 256 }
  0x14   :  { %s27_s24 = sshll.u32 %s208_s23, 4  ;;  %p156_p8 = scmp.ne.s32.totalorder %s262_s1, %s155_s27  ;;  %s28_s24 = int_to_ptr.vmem [resolvable:$true] %s27_s24 }
  0x15   :  { %p159_p9 = scmp.lt.u32.totalorder %s155_s27, %s262_s1 }
  0x17   :  { %p161_p10 = pnand %p159_p9, %p156_p8 }
  0x19   :  { %164 = shalt.err (!%p161_p10)
}
  0x1a   :  { %s165_s4 = scalar_lea.vmem %s28_s24, 256  ;;  %p170_p12 = scmp.lt.s32.totalorder %s28_s24, %s28_s24 }
  0x1b   :  { %p166_p11 = scmp.ne.s32.totalorder %s28_s24, %s165_s4  ;;  %p171_p13 = scmp.lt.s32.totalorder %s165_s4, %s165_s4 }
  0x1d   :  { %p172_p0 = por %p171_p13, %p170_p12 }
  0x1f   :  { %p173_p1 = pnand %p172_p0, %p166_p11 }
  0x21   :  { %176 = shalt.err (!%p173_p1)
}
  0x22   :  { %33 = dma.hbm_to_vmem [thread:$0]  %s262_s1, 256, %s28_s24, [#allocation6], %s206_s19, %s206_s19, %s207_s20  }
  0x23   :  { %199 = dma.done.wait [#allocation3], 256  }
  0x24   :  { %200 = vsyncadd [#allocation3], 4294967040 }
  0x25   :  { %201 = dma.done.wait [#allocation6], 256  }
  0x26   :  { %202 = vsyncadd [#allocation6], 4294967040  ;;  %v40_v0 = vld [vmem:[#allocation2] sm:$0xff]  ;;  %v41_v1 = vld [vmem:[#allocation2 + $0x8] sm:$0xff]  ;;  %s209_s1 = smov [#allocation7]  }
  0x27   :  { %v44_v2 = vand.u32 2147483647, %v40_v0  ;;  %v45_v3 = vand.u32 2147483647, %v41_v1  ;;  %v42_v14 = vld [vmem:[#allocation5] sm:$0xff]  ;;  %v43_v15 = vld [vmem:[#allocation5 + $0x8] sm:$0xff] }
  0x28   :  { %v52_v17 = vmax.f32 %v40_v0, 0.0  ;;  %v54_v18 = vmul.f32 %v42_v14, %v40_v0  ;;  %v53_v21 = vmax.f32 %v41_v1, 0.0  ;;  %v55_v22 = vmul.f32 %v43_v15, %v41_v1  ;;  %s106_s6 = sshll.u32 %s209_s1, 4  ;;  %s107_s6 = int_to_ptr.vmem [resolvable:$true] %s106_s6 }
  0x29   :  { %v46_v4 = vsub.f32 0.0, %v44_v2  ;;  %v47_v5 = vsub.f32 0.0, %v45_v3  ;;  %vm82_vm2 = vcmp.ge.f32.partialorder %v40_v0, 0.0  ;;  %vm83_vm3 = vcmp.ge.f32.partialorder %v41_v1, 0.0  ;;  %s177_s7 = scalar_lea.vmem %s107_s6, 16  ;;  %s181_s8 = scalar_lea.vmem %s107_s6, 32 }
  0x2a   :  { %v56_v26 = vsub.f32 %v52_v17, %v54_v18  ;;  %v57_v29 = vsub.f32 %v53_v21, %v55_v22  ;;  %p178_p2 = scmp.ne.s32.totalorder %s107_s6, %s177_s7  ;;  %p182_p3 = scmp.lt.s32.totalorder %s107_s6, %s107_s6 }
  0x2b   :  { %v48_v6 = vmul.f32 1.442695, %v46_v4  ;;  %v50_v7 = vmul.f32 1.442695, %v47_v5  ;;  %p183_p4 = scmp.lt.s32.totalorder %s181_s8, %s177_s7 }
  0x2d   :  { %121 = vpow2.f32 %v48_v6  ;;  %p184_p5 = por %p183_p4, %p182_p3 }
  0x2e   :  { %123 = vpow2.f32 %v50_v7 }
  0x2f   :  { %p185_p6 = pnand %p184_p5, %p178_p2 }
  0x37   :  { %v122_v8 = vpop.eup %121 }
  0x38   :  { %v124_v9 = vpop.eup %123  ;;  %v58_v10 = vadd.f32 1.0, %v122_v8  ;;  %v61_v12 = vmul.f32 -0.5, %v122_v8  ;;  %v64_v19 = vand.u32 2147483647, %v122_v8 }
  0x39   :  { %v67_v11 = vadd.f32 1.0, %v124_v9  ;;  %v70_v13 = vmul.f32 -0.5, %v124_v9  ;;  %v73_v23 = vand.u32 2147483647, %v124_v9 }
  0x3a   :  { %125 = vlog2.f32 %v58_v10  ;;  %v62_v16 = vadd.f32 1.0, %v61_v12  ;;  %vm65_vm0 = vcmp.lt.f32.partialorder %v64_v19, 0.0004427343 }
  0x3b   :  { %127 = vlog2.f32 %v67_v11  ;;  %v71_v20 = vadd.f32 1.0, %v70_v13  ;;  %vm74_vm1 = vcmp.lt.f32.partialorder %v73_v23, 0.0004427343 }
  0x3c   :  { %129 = vrcp.f32 %v58_v10  ;;  %v63_v24 = vmul.f32 %v122_v8, %v62_v16 }
  0x3d   :  { %131 = vrcp.f32 %v67_v11  ;;  %v72_v27 = vmul.f32 %v124_v9, %v71_v20 }
  0x44   :  { %v126_v25 = vpop.eup %125 }
  0x45   :  { %v128_v28 = vpop.eup %127  ;;  %v60_v30 = vmul.f32 0.6931472, %v126_v25 }
  0x46   :  { %v130_v31 = vpop.eup %129  ;;  %v69_v32 = vmul.f32 0.6931472, %v128_v28 }
  0x47   :  { %v132_v33 = vpop.eup %131  ;;  %v66_v34 = vsel %vm65_vm0, %v63_v24, %v60_v30  ;;  %v84_v35 = vmul.f32 %v130_v31, %v122_v8 }
  0x48   :  { %v75_v36 = vsel %vm74_vm1, %v72_v27, %v69_v32  ;;  %v76_v37 = vadd.f32 %v66_v34, %v56_v26  ;;  %v85_v38 = vmul.f32 %v132_v33, %v124_v9 }
  0x49   :  { %v77_v39 = vadd.f32 %v75_v36, %v57_v29  ;;  %v86_v40 = vsel %vm82_vm2, %v84_v35, %v130_v31 }
  0x4a   :  { %v87_v41 = vsel %vm83_vm3, %v85_v38, %v132_v33  ;;  %v88_v42 = vmul.f32 %v86_v40, %v86_v40 }
  0x4b   :  { %v89_v43 = vmul.f32 %v87_v41, %v87_v41 }
  0x4c   :  { %v90_v44 = vmul.f32 %v88_v42, %v76_v37 }
  0x4d   :  { %v91_v45 = vmul.f32 %v89_v43, %v77_v39 }
  0x4f   :  { %v92_v46 = vadd.f32 %v91_v45, %v90_v44 }
  0x51   :  { %v93_v47 = vrot.slane %v92_v46, 4 }
  0x53   :  { %v94_v48 = vadd.f32 %v93_v47, %v92_v46 }
  0x55   :  { %v95_v49 = vrot.slane %v94_v48, 2 }
  0x57   :  { %v96_v50 = vadd.f32 %v95_v49, %v94_v48 }
  0x59   :  { %v97_v51 = vrot.slane %v96_v50, 1 }
  0x5b   :  { %v98_v52 = vadd.f32 %v97_v51, %v96_v50 }
  0x5d   :  { %99 = vst [vmem:[#allocation7] sm:$0x1] %v98_v52 }
  0x5e   :  { %188 = shalt.err (!%p185_p6)
}
  0x5f   :  { %s189_s11 = scalar_lea.hbm %s263_s2, 16 }
  0x60   :  { %p190_p7 = scmp.ne.s32.totalorder %s263_s2, %s189_s11  ;;  %p193_p8 = scmp.lt.u32.totalorder %s189_s11, %s263_s2 }
  0x62   :  { %p195_p9 = pnand %p193_p8, %p190_p7 }
  0x64   :  { %198 = shalt.err (!%p195_p9)
}
  0x65   :  { %109 = dma.vmem_to_hbm [thread:$0]  %s107_s6, 16, %s263_s2, [#allocation4]  }
  0x66   :  { %203 = dma.done.wait [#allocation4], 16  }
  0x67   :  { %204 = vsyncadd [#allocation4], 4294967280 }
  0x68   :  { %113 = vsyncpa [#allocation3], 1 }
  0x69   :  { %114 = vsyncpa [#allocation6], 1 }
  0x6a   :  { %115 = vsyncpa [#allocation4], 1 }

</bundles_post_ra>
